<compile_context>
chip_gen: v5e
topology: v5e:2x2
jax: 0.10.0
libtpu: 0.0.40
codegen_flags: <defaults>
</compile_context>

<pallas_src>
import functools

import numpy as np
import jax
import jax.numpy as jnp
from jax.experimental import pallas as pl
from jax.experimental.pallas import tpu as pltpu


OUT_PAD = 128      # lane-dense padded width of the final (2-class) layer
DEFAULT_TB = 512   # max batch-tile rows (multiple of 16 for bf16 packing)


def _width_for(total_input_size: int) -> int:
    # Same rule as the PyTorch module's __init__.
    if total_input_size < 30:
        return 20
    elif total_input_size <= 512:
        return 256
    else:
        return 512


def _cdiv(a: int, b: int) -> int:
    return -(-a // b)


def _round_up(n: int, m: int) -> int:
    return ((n + m - 1) // m) * m


def _choose_tiling(B: int, default_tb: int = DEFAULT_TB):
    """Pick (TB, B_pad).

    TB is always a multiple of 16 (bf16 packs 16 sublanes per vreg) and, for
    any batch larger than 32 rows, we emit >= 2 grid steps so v7x's two
    TensorCores both participate. For batches beyond DEFAULT_TB the tile is
    shrunk to the smallest multiple of 16 that keeps the step count, limiting
    batch padding to at most ~16*steps rows.
    """
    b16 = _round_up(B, 16)
    if b16 <= 32:
        return b16, b16
    if b16 <= 2 * default_tb:
        tb = _round_up(_cdiv(b16, 2), 16)
        return tb, 2 * tb
    steps = _cdiv(b16, default_tb)
    tb = _round_up(_cdiv(b16, steps), 16)
    return tb, steps * tb


def _mlp_kernel(x_ref, w1_ref, w2_ref, w3_ref, wo_ref, bias_ref, out_ref,
                *, width: int, out_pad: int):
    """One batch tile of the 4-layer MLP.

    x_ref:    [TB, F]           f32 (cast to bf16 in-kernel)
    w1_ref:   [F, width]        bf16
    w2_ref:   [width, width]    bf16
    w3_ref:   [width, width]    bf16
    wo_ref:   [width, out_pad]  bf16 (zero-padded beyond column n_out)
    bias_ref: [4, BIAS_COLS]    f32  (rows: b1, b2, b3, bo; zero-padded)
    out_ref:  [TB, out_pad]     bf16
    """
    # f32 -> bf16 cast rides on the VPU (ample slack under the MXU); avoids a
    # separate XLA pass over x in HBM before the kernel.
    x = x_ref[...].astype(jnp.bfloat16)

    b1 = bias_ref[0:1, :width]
    b2 = bias_ref[1:2, :width]
    b3 = bias_ref[2:3, :width]
    bo = bias_ref[3:4, :out_pad]

    # MXU matmuls with f32 accumulation; ReLU on the VPU; re-cast activations
    # to bf16 between layers to keep vreg/VMEM footprint small.
    h = jnp.dot(x, w1_ref[...], preferred_element_type=jnp.float32) + b1
    h = jnp.maximum(h, 0.0).astype(jnp.bfloat16)

    h = jnp.dot(h, w2_ref[...], preferred_element_type=jnp.float32) + b2
    h = jnp.maximum(h, 0.0).astype(jnp.bfloat16)

    h = jnp.dot(h, w3_ref[...], preferred_element_type=jnp.float32) + b3
    h = jnp.maximum(h, 0.0).astype(jnp.bfloat16)

    # Lane-dense padded output layer: full 128-lane unmasked store; bf16 slab
    # halves the HBM writeback vs f32. (Note: 126 of the 128 output columns
    # are zero padding — a ~9% MXU-FLOP overhead that only matters on the
    # compute-bound v5e; kept as a matmul for simplicity/robustness.)
    logits = jnp.dot(h, wo_ref[...], preferred_element_type=jnp.float32) + bo
    out_ref[...] = logits.astype(out_ref.dtype)


def discriminative_al_forward(x, params, n_out=2):
    """Pallas wrapper. x: [B, F] float32. Returns (base_model_output, logits)."""
    w1, w2, w3, wo_pad, bias_pack = params
    B, F = x.shape
    width = w1.shape[1]
    out_pad = wo_pad.shape[1]
    bias_cols = bias_pack.shape[1]

    TB, B_pad = _choose_tiling(B)
    x_pad = x if B_pad == B else jnp.pad(x, ((0, B_pad - B), (0, 0)))

    grid = (B_pad // TB,)

    flops = 2 * B_pad * (F * width + 2 * width * width + width * out_pad)
    bytes_accessed = (
        B_pad * F * 4                                                 # x (f32)
        + (F * width + 2 * width * width + width * out_pad) * 2      # weights (bf16)
        + 4 * bias_cols * 4                                           # biases (f32)
        + B_pad * out_pad * 2                                         # logits (bf16)
    )

    kernel = functools.partial(_mlp_kernel, width=width, out_pad=out_pad)

    logits_pad = pl.pallas_call(
        kernel,
        out_shape=jax.ShapeDtypeStruct((B_pad, out_pad), jnp.bfloat16),
        grid=grid,
        in_specs=[
            # Batch-tiled activations (pipelined across the grid).
            pl.BlockSpec((TB, F), lambda i: (i, 0)),
            # Weights / biases: same block every step -> fetched once, stay
            # resident in VMEM for the whole grid.
            pl.BlockSpec((F, width), lambda i: (0, 0)),
            pl.BlockSpec((width, width), lambda i: (0, 0)),
            pl.BlockSpec((width, width), lambda i: (0, 0)),
            pl.BlockSpec((width, out_pad), lambda i: (0, 0)),
            pl.BlockSpec((4, bias_cols), lambda i: (0, 0)),
        ],
        out_specs=pl.BlockSpec((TB, out_pad), lambda i: (i, 0)),
        compiler_params=pltpu.CompilerParams(
            dimension_semantics=("parallel",)),
        cost_estimate=pl.CostEstimate(
            flops=flops, transcendentals=0, bytes_accessed=bytes_accessed),
    )(x_pad, w1, w2, w3, wo_pad, bias_pack)

    logits = logits_pad[:B, :n_out].astype(jnp.float32)

    # base_model is None in this synthetic setup -> base_model_output == x.
    return x, logits


def init_params(key, total_input_size, width, n_out=2):
    """Deterministic parameter init matching the module's layer shapes.

    PyTorch nn.Linear(in, out) -> weight (out, in); we store the transpose
    (in, out) so the kernel does x @ W + b.  Uniform(-1/sqrt(in), 1/sqrt(in))
    like PyTorch's default reset_parameters.

    Returns kernel-ready params:
      w1, w2, w3         bf16 [in, out]
      wo_pad             bf16 [width, OUT_PAD] (zero-padded beyond n_out cols)
      bias_pack          f32  [4, max(width, OUT_PAD)] rows = b1, b2, b3, bo
    """
    dims = [(total_input_size, width), (width, width), (width, width), (width, n_out)]
    ws_f32, bs_f32 = [], []
    for (fan_in, fan_out) in dims:
        key, kw, kb = jax.random.split(key, 3)
        bound = 1.0 / np.sqrt(fan_in)
        ws_f32.append(jax.random.uniform(kw, (fan_in, fan_out), jnp.float32, -bound, bound))
        bs_f32.append(jax.random.uniform(kb, (fan_out,), jnp.float32, -bound, bound))

    bias_cols = max(width, OUT_PAD)

    w1 = ws_f32[0].astype(jnp.bfloat16)
    w2 = ws_f32[1].astype(jnp.bfloat16)
    w3 = ws_f32[2].astype(jnp.bfloat16)
    wo_pad = jnp.zeros((width, OUT_PAD), jnp.float32).at[:, :n_out].set(ws_f32[3])
    wo_pad = wo_pad.astype(jnp.bfloat16)

    bias_pack = jnp.zeros((4, bias_cols), jnp.float32)
    bias_pack = bias_pack.at[0, :width].set(bs_f32[0])
    bias_pack = bias_pack.at[1, :width].set(bs_f32[1])
    bias_pack = bias_pack.at[2, :width].set(bs_f32[2])
    bias_pack = bias_pack.at[3, :n_out].set(bs_f32[3])

    kernel_params = (w1, w2, w3, wo_pad, bias_pack)
    ref_params = (ws_f32, bs_f32)
    return kernel_params, ref_params


def _reference_forward(x, kernel_params, n_out=2):
    """Plain-JAX reference with the same bf16-weight / f32-accumulate math
    (including the bf16 logits slab)."""
    w1, w2, w3, wo_pad, bias_pack = kernel_params
    width = w1.shape[1]
    out_pad = wo_pad.shape[1]
    b1 = bias_pack[0:1, :width]
    b2 = bias_pack[1:2, :width]
    b3 = bias_pack[2:3, :width]
    bo = bias_pack[3:4, :out_pad]

    h = jnp.dot(x.astype(jnp.bfloat16), w1, preferred_element_type=jnp.float32) + b1
    h = jnp.maximum(h, 0.0).astype(jnp.bfloat16)
    h = jnp.dot(h, w2, preferred_element_type=jnp.float32) + b2
    h = jnp.maximum(h, 0.0).astype(jnp.bfloat16)
    h = jnp.dot(h, w3, preferred_element_type=jnp.float32) + b3
    h = jnp.maximum(h, 0.0).astype(jnp.bfloat16)
    logits_pad = jnp.dot(h, wo_pad, preferred_element_type=jnp.float32) + bo
    logits_pad = logits_pad.astype(jnp.bfloat16)
    return logits_pad[:, :n_out].astype(jnp.float32)


if __name__ == "__main__":
    # input_shapes = [(32,)] -> total_input_size = 32 -> width = 256
    input_shapes = [(32,)]
    total_input_size = int(np.sum([np.prod(s) for s in input_shapes]))
    width = _width_for(total_input_size)

    B = 8
    key = jax.random.PRNGKey(0)
    key, kx = jax.random.split(key)
    x = jax.random.normal(kx, (B, total_input_size), jnp.float32)

    kernel_params, _ = init_params(key, total_input_size, width)

    base_out, logits = discriminative_al_forward(x, kernel_params)
    jax.block_until_ready((base_out, logits))

    # Correctness check against a plain-JAX reference using the same
    # bf16-weight / f32-accumulate arithmetic (bf16 logits slab included).
    ref = _reference_forward(x, kernel_params)
    assert base_out.shape == (B, total_input_size)
    assert logits.shape == (B, 2)
    np.testing.assert_allclose(np.asarray(base_out), np.asarray(x), rtol=0, atol=0)
    np.testing.assert_allclose(np.asarray(logits), np.asarray(ref), rtol=2e-2, atol=2e-2)

    # TODO(synk): base_model is None here; the base_model feature-extraction
    # branch of forward() has no standalone Pallas equivalent.
    print("KERNEL_OK")
</pallas_src>

<mosaic_0001>
module attributes {stable_mosaic.version = 11 : i64} {
  func.func @_mlp_kernel(%arg0: i32, %arg1: memref<16x32xf32, #tpu.memory_space<vmem>>, %arg2: memref<32x256xbf16, #tpu.memory_space<vmem>>, %arg3: memref<256x256xbf16, #tpu.memory_space<vmem>>, %arg4: memref<256x256xbf16, #tpu.memory_space<vmem>>, %arg5: memref<256x128xbf16, #tpu.memory_space<vmem>>, %arg6: memref<4x256xf32, #tpu.memory_space<vmem>>, %arg7: memref<16x128xbf16, #tpu.memory_space<vmem>>) attributes {dimension_semantics = [#tpu.dimension_semantics<parallel>], iteration_bounds = array<i64: 1>, scalar_prefetch = 0 : i64, scratch_operands = 0 : i64, tpu.core_type = #tpu.core_type<tc>, window_params = [{transform_indices = @transform_0, window_bounds = array<i64: 16, 32>}, {pipeline_mode = #tpu.pipeline_mode<synchronous>, transform_indices = @transform_1, window_bounds = array<i64: 32, 256>}, {pipeline_mode = #tpu.pipeline_mode<synchronous>, transform_indices = @transform_2, window_bounds = array<i64: 256, 256>}, {pipeline_mode = #tpu.pipeline_mode<synchronous>, transform_indices = @transform_3, window_bounds = array<i64: 256, 256>}, {pipeline_mode = #tpu.pipeline_mode<synchronous>, transform_indices = @transform_4, window_bounds = array<i64: 256, 128>}, {pipeline_mode = #tpu.pipeline_mode<synchronous>, transform_indices = @transform_5, window_bounds = array<i64: 4, 256>}, {transform_indices = @transform_6, window_bounds = array<i64: 16, 128>}]} {
    %c0 = arith.constant 0 : index
    %c0_0 = arith.constant 0 : index
    %0 = vector.load %arg1[%c0, %c0_0] : memref<16x32xf32, #tpu.memory_space<vmem>>, vector<16x32xf32>
    %1 = arith.truncf %0 : vector<16x32xf32> to vector<16x32xbf16>
    %c0_1 = arith.constant 0 : index
    %c0_2 = arith.constant 0 : index
    %2 = vector.load %arg6[%c0_1, %c0_2] : memref<4x256xf32, #tpu.memory_space<vmem>>, vector<1x256xf32>
    %c1 = arith.constant 1 : index
    %c0_3 = arith.constant 0 : index
    %3 = vector.load %arg6[%c1, %c0_3] : memref<4x256xf32, #tpu.memory_space<vmem>>, vector<1x256xf32>
    %c2 = arith.constant 2 : index
    %c0_4 = arith.constant 0 : index
    %4 = vector.load %arg6[%c2, %c0_4] : memref<4x256xf32, #tpu.memory_space<vmem>>, vector<1x256xf32>
    %c3 = arith.constant 3 : index
    %c0_5 = arith.constant 0 : index
    %5 = vector.load %arg6[%c3, %c0_5] : memref<4x256xf32, #tpu.memory_space<vmem>>, vector<1x128xf32>
    %c0_6 = arith.constant 0 : index
    %c0_7 = arith.constant 0 : index
    %6 = vector.load %arg2[%c0_6, %c0_7] : memref<32x256xbf16, #tpu.memory_space<vmem>>, vector<32x256xbf16>
    %cst = arith.constant dense<0.000000e+00> : vector<16x256xf32>
    %7 = tpu.matmul %1, %6, %cst {dimension_numbers = #tpu.dot_dimension_numbers<[1], [0], [0], [1], [0, 0, 1, 1], [], []>} : vector<16x32xbf16>, vector<32x256xbf16>, vector<16x256xf32> -> vector<16x256xf32>
    %8 = vector.broadcast %2 : vector<1x256xf32> to vector<16x256xf32>
    %9 = arith.addf %7, %8 : vector<16x256xf32>
    %cst_8 = arith.constant 0.000000e+00 : f32
    %10 = vector.broadcast %cst_8 : f32 to vector<16x256xf32>
    %11 = arith.maximumf %9, %10 : vector<16x256xf32>
    %12 = arith.truncf %11 : vector<16x256xf32> to vector<16x256xbf16>
    %c0_9 = arith.constant 0 : index
    %c0_10 = arith.constant 0 : index
    %13 = vector.load %arg3[%c0_9, %c0_10] : memref<256x256xbf16, #tpu.memory_space<vmem>>, vector<256x256xbf16>
    %cst_11 = arith.constant dense<0.000000e+00> : vector<16x256xf32>
    %14 = tpu.matmul %12, %13, %cst_11 {dimension_numbers = #tpu.dot_dimension_numbers<[1], [0], [0], [1], [0, 0, 1, 1], [], []>} : vector<16x256xbf16>, vector<256x256xbf16>, vector<16x256xf32> -> vector<16x256xf32>
    %15 = vector.broadcast %3 : vector<1x256xf32> to vector<16x256xf32>
    %16 = arith.addf %14, %15 : vector<16x256xf32>
    %cst_12 = arith.constant 0.000000e+00 : f32
    %17 = vector.broadcast %cst_12 : f32 to vector<16x256xf32>
    %18 = arith.maximumf %16, %17 : vector<16x256xf32>
    %19 = arith.truncf %18 : vector<16x256xf32> to vector<16x256xbf16>
    %c0_13 = arith.constant 0 : index
    %c0_14 = arith.constant 0 : index
    %20 = vector.load %arg4[%c0_13, %c0_14] : memref<256x256xbf16, #tpu.memory_space<vmem>>, vector<256x256xbf16>
    %cst_15 = arith.constant dense<0.000000e+00> : vector<16x256xf32>
    %21 = tpu.matmul %19, %20, %cst_15 {dimension_numbers = #tpu.dot_dimension_numbers<[1], [0], [0], [1], [0, 0, 1, 1], [], []>} : vector<16x256xbf16>, vector<256x256xbf16>, vector<16x256xf32> -> vector<16x256xf32>
    %22 = vector.broadcast %4 : vector<1x256xf32> to vector<16x256xf32>
    %23 = arith.addf %21, %22 : vector<16x256xf32>
    %cst_16 = arith.constant 0.000000e+00 : f32
    %24 = vector.broadcast %cst_16 : f32 to vector<16x256xf32>
    %25 = arith.maximumf %23, %24 : vector<16x256xf32>
    %26 = arith.truncf %25 : vector<16x256xf32> to vector<16x256xbf16>
    %c0_17 = arith.constant 0 : index
    %c0_18 = arith.constant 0 : index
    %27 = vector.load %arg5[%c0_17, %c0_18] : memref<256x128xbf16, #tpu.memory_space<vmem>>, vector<256x128xbf16>
    %cst_19 = arith.constant dense<0.000000e+00> : vector<16x128xf32>
    %28 = tpu.matmul %26, %27, %cst_19 {dimension_numbers = #tpu.dot_dimension_numbers<[1], [0], [0], [1], [0, 0, 1, 1], [], []>} : vector<16x256xbf16>, vector<256x128xbf16>, vector<16x128xf32> -> vector<16x128xf32>
    %29 = vector.broadcast %5 : vector<1x128xf32> to vector<16x128xf32>
    %30 = arith.addf %28, %29 : vector<16x128xf32>
    %31 = arith.truncf %30 : vector<16x128xf32> to vector<16x128xbf16>
    %c0_20 = arith.constant 0 : index
    %c0_21 = arith.constant 0 : index
    %32 = vector.load %arg7[%c0_20, %c0_21] : memref<16x128xbf16, #tpu.memory_space<vmem>>, vector<16x128xbf16>
    tpu.vector_store %arg7[%c0_20, %c0_21], %31 {strides = array<i32>} : memref<16x128xbf16, #tpu.memory_space<vmem>>, vector<16x128xbf16>,
    return
  }
  func.func @transform_0(%arg0: i32) -> (i32, i32) {
    %c0_i32 = arith.constant 0 : i32
    %c0_i32_0 = arith.constant 0 : i32
    return %arg0, %c0_i32 : i32, i32
  }
  func.func @transform_1(%arg0: i32) -> (i32, i32) {
    %c0_i32 = arith.constant 0 : i32
    %c0_i32_0 = arith.constant 0 : i32
    %c0_i32_1 = arith.constant 0 : i32
    return %c0_i32, %c0_i32_0 : i32, i32
  }
  func.func @transform_2(%arg0: i32) -> (i32, i32) {
    %c0_i32 = arith.constant 0 : i32
    %c0_i32_0 = arith.constant 0 : i32
    %c0_i32_1 = arith.constant 0 : i32
    return %c0_i32, %c0_i32_0 : i32, i32
  }
  func.func @transform_3(%arg0: i32) -> (i32, i32) {
    %c0_i32 = arith.constant 0 : i32
    %c0_i32_0 = arith.constant 0 : i32
    %c0_i32_1 = arith.constant 0 : i32
    return %c0_i32, %c0_i32_0 : i32, i32
  }
  func.func @transform_4(%arg0: i32) -> (i32, i32) {
    %c0_i32 = arith.constant 0 : i32
    %c0_i32_0 = arith.constant 0 : i32
    %c0_i32_1 = arith.constant 0 : i32
    return %c0_i32, %c0_i32_0 : i32, i32
  }
  func.func @transform_5(%arg0: i32) -> (i32, i32) {
    %c0_i32 = arith.constant 0 : i32
    %c0_i32_0 = arith.constant 0 : i32
    %c0_i32_1 = arith.constant 0 : i32
    return %c0_i32, %c0_i32_0 : i32, i32
  }
  func.func @transform_6(%arg0: i32) -> (i32, i32) {
    %c0_i32 = arith.constant 0 : i32
    %c0_i32_0 = arith.constant 0 : i32
    return %arg0, %c0_i32 : i32, i32
  }
}

</mosaic_0001>

<bundles_post_ra>
// kernel: tpu_custom_call.1
= control target key start
LH: loop header
LB: loop body
LE: loop exit
PB: predicated region body
PF: predicated region fallthrough
CT: control target
= control target key end

     0   :  { %11 = vsyncpa [#allocation3], 0  ;;  %s1586_s0 = inlined_call_operand.hbm [shape: f32[16,32], index: 0, kind: input, shape index: {}]   ;;  %s1587_s1 = inlined_call_operand.hbm [shape: bf16[32,256], index: 1, kind: input, shape index: {}]   ;;  %s1588_s2 = inlined_call_operand.hbm [shape: bf16[256,256], index: 2, kind: input, shape index: {}]   ;;  %s1589_s3 = inlined_call_operand.hbm [shape: bf16[256,256], index: 3, kind: input, shape index: {}]   ;;  %s1590_s4 = inlined_call_operand.hbm [shape: bf16[256,128], index: 4, kind: input, shape index: {}]   ;;  %s1591_s5 = inlined_call_operand.hbm [shape: f32[4,256], index: 5, kind: input, shape index: {}]   ;;  %s1592_s6 = inlined_call_operand.hbm [shape: bf16[16,128], index: 6, kind: output, shape index: {}]  }
   0x1   :  { %12 = vsyncpa [#allocation6], 0 }
   0x2   :  { %13 = vsyncpa [#allocation9], 0 }
   0x3   :  { %14 = vsyncpa [#allocation12], 0 }
   0x4   :  { %15 = vsyncpa [#allocation4], 0  ;;  %s33_s23 = sshll.u32 %s1587_s1, 4  ;;  %s1511_s24 = smov [#allocation5]   ;;  %s34_s23 = int_to_ptr.hbm [resolvable:$true] %s33_s23 }
   0x5   :  { %s35_s25 = sshll.u32 %s1511_s24, 4  ;;  %s59_s28 = sshll.u32 %s1589_s3, 4  ;;  %s36_s25 = int_to_ptr.vmem [resolvable:$true] %s35_s25  ;;  %s60_s28 = int_to_ptr.hbm [resolvable:$true] %s59_s28 }
   0x6   :  { %s1512_s29 = smov 128   ;;  %s1513_s30 = smov 8  }
   0x7   :  { %41 = dma.hbm_to_vmem [thread:$0]  %s34_s23, 512, %s36_s25, [#allocation6], %s1512_s29, %s1512_s29, %s1513_s30  }
   0x8   :  { %s1514_s7 = smov [#allocation8]   ;;  %s20_s11 = sshll.u32 %s1586_s0, 4  ;;  %s21_s11 = int_to_ptr.hbm [resolvable:$true] %s20_s11 }
   0x9   :  { %s61_s8 = sshll.u32 %s1514_s7, 4  ;;  %s46_s13 = sshll.u32 %s1588_s2, 4  ;;  %s62_s8 = int_to_ptr.vmem [resolvable:$true] %s61_s8  ;;  %s47_s13 = int_to_ptr.hbm [resolvable:$true] %s46_s13 }
   0xa   :  { %67 = dma.hbm_to_vmem [thread:$0]  %s60_s28, 4096, %s62_s8, [#allocation9], %s1512_s29, %s1512_s29, %s1513_s30  }
   0xb   :  { %s1515_s14 = smov [#allocation2]   ;;  %s1516_s3 = smov [#allocation7]  }
   0xc   :  { %s22_s15 = sshll.u32 %s1515_s14, 4  ;;  %s48_s16 = sshll.u32 %s1516_s3, 4  ;;  %s23_s15 = int_to_ptr.vmem [resolvable:$true] %s22_s15  ;;  %s49_s16 = int_to_ptr.vmem [resolvable:$true] %s48_s16 }
   0xd   :  { %28 = dma.hbm_to_vmem [thread:$0]  %s21_s11, 256, %s23_s15, [#allocation3], %s1512_s29, %s1512_s29, %s1513_s30  }
   0xe   :  { %s72_s19 = sshll.u32 %s1590_s4, 4  ;;  %s1517_s0 = smov [#allocation10]   ;;  %s73_s19 = int_to_ptr.hbm [resolvable:$true] %s72_s19 }
   0xf   :  { %54 = dma.hbm_to_vmem [thread:$0]  %s47_s13, 4096, %s49_s16, [#allocation6], %s1512_s29, %s1512_s29, %s1513_s30  }
  0x10   :  { %s74_s20 = sshll.u32 %s1517_s0, 4  ;;  %s86_s2 = sshll.u32 %s1591_s5, 4  ;;  %s75_s20 = int_to_ptr.vmem [resolvable:$true] %s74_s20  ;;  %s87_s2 = int_to_ptr.hbm [resolvable:$true] %s86_s2 }
  0x11   :  { %s1518_s23 = smov 64   ;;  %s1519_s24 = smov 4  }
  0x12   :  { %80 = dma.hbm_to_vmem [thread:$0]  %s73_s19, 2048, %s75_s20, [#allocation9], %s1518_s23, %s1518_s23, %s1519_s24  }
  0x13   :  { %s1520_s25 = smov [#allocation11]  }
  0x14   :  { %s88_s26 = sshll.u32 %s1520_s25, 4  ;;  %s89_s26 = int_to_ptr.vmem [resolvable:$true] %s88_s26 }
  0x15   :  { %91 = dma.hbm_to_vmem [thread:$0]  %s87_s2, 128, %s89_s26, [#allocation12]  }
  0x16   :  { %1501 = dma.done.wait [#allocation3], 256  }
  0x17   :  { %1502 = vsyncadd [#allocation3], 4294967040 }
  0x18   :  { %1503 = dma.done.wait [#allocation6], 4608  }
  0x19   :  { %1504 = vsyncadd [#allocation6], 4294962688 }
  0x1a   :  { %1505 = dma.done.wait [#allocation9], 6144  }
  0x1b   :  { %1506 = vsyncadd [#allocation9], 4294961152 }
  0x1c   :  { %1507 = dma.done.wait [#allocation12], 128  }
  0x1d   :  { %1508 = vsyncadd [#allocation12], 4294967168  ;;  %v904_v0 = vld [vmem:[#allocation5 + $0x10] sm:$0xf]  ;;  %v1235_v1 = vld [vmem:[#allocation5 + $0x14] sm:$0xf0] }
  0x1e   :  { %v1234_v2 = vld [vmem:[#allocation5 + $0x14] sm:$0xf]  ;;  %v905_v3 = vor.u32 %v1235_v1, %v904_v0  ;;  %v906_v4 = vld [vmem:[#allocation5 + $0x18] sm:$0xf0]  ;;  %v896_v5 = vld [vmem:[#allocation5] sm:$0xf] }
  0x1f   :  { %v1233_v6 = vld [vmem:[#allocation5 + $0x4] sm:$0xf0]  ;;  %v909_v7 = vor.u32 %v1234_v2, %v906_v4  ;;  %v1232_v8 = vld [vmem:[#allocation5 + $0x4] sm:$0xf]  ;;  %v898_v9 = vld [vmem:[#allocation5 + $0x8] sm:$0xf0] }
  0x20   :  { %v117_v10 = vld [vmem:[#allocation2] sm:$0xff]  ;;  %165 = vmatpush.bf16.msra.mxu0 %v905_v3  ;;  %v897_v11 = vor.u32 %v1233_v6, %v896_v5  ;;  %v118_v12 = vld [vmem:[#allocation2 + $0x8] sm:$0xff]  ;;  %vm155_vm0 = vcmask 261120   ;;  %v901_v15 = vor.u32 %v1232_v8, %v898_v9  ;;  %v962_v27 = vld [vmem:[#allocation7 + $0x60] sm:$0xf]  ;;  %s1521_s4 = smov [#allocation13]  }
  0x21   :  { %v970_v13 = vld [vmem:[#allocation7 + $0x70] sm:$0xf]  ;;  %v1251_v14 = vld [vmem:[#allocation7 + $0x74] sm:$0xf0]  ;;  %179 = vmatpush.bf16.msra.mxu1 %v909_v7  ;;  %v1250_v19 = vld [vmem:[#allocation7 + $0x74] sm:$0xf]  ;;  %v119_v24 = vpack.c.bf16 %v118_v12, %v117_v10 }
  0x22   :  { %v971_v16 = vor.u32 %v1251_v14, %v970_v13  ;;  %v1034_v17 = vld [vmem:[#allocation7 + $0xf0] sm:$0xf]  ;;  %v1267_v18 = vld [vmem:[#allocation7 + $0xf4] sm:$0xf0]  ;;  %v972_v21 = vld [vmem:[#allocation7 + $0x78] sm:$0xf0] }
  0x23   :  { %v1035_v20 = vor.u32 %v1267_v18, %v1034_v17  ;;  %v1266_v22 = vld [vmem:[#allocation7 + $0xf4] sm:$0xf]  ;;  %v1036_v23 = vld [vmem:[#allocation7 + $0xf8] sm:$0xf0]  ;;  %v975_v25 = vor.u32 %v1250_v19, %v972_v21  ;;  %v1249_v28 = vld [vmem:[#allocation7 + $0x64] sm:$0xf0] }
  0x24   :  { %390 = vmatpush.bf16.msra.mxu2 %v971_v16  ;;  %v1039_v26 = vor.u32 %v1266_v22, %v1036_v23  ;;  %v1026_v29 = vld [vmem:[#allocation7 + $0xe0] sm:$0xf]  ;;  %166 = vmatpush.bf16.msra.mxu0 %v897_v11  ;;  %v963_v30 = vor.u32 %v1249_v28, %v962_v27  ;;  %v1265_v31 = vld [vmem:[#allocation7 + $0xe4] sm:$0xf0]  ;;  %v1248_v32 = vld [vmem:[#allocation7 + $0x64] sm:$0xf] }
  0x25   :  { %404 = vmatpush.bf16.msra.mxu3 %v1035_v20  ;;  %v964_v33 = vld [vmem:[#allocation7 + $0x68] sm:$0xf0]  ;;  %180 = vmatpush.bf16.msra.mxu1 %v901_v15  ;;  %v1027_v34 = vor.u32 %v1265_v31, %v1026_v29  ;;  %v1264_v36 = vld [vmem:[#allocation7 + $0xe4] sm:$0xf]  ;;  %v954_v38 = vld [vmem:[#allocation7 + $0x50] sm:$0xf] }
  0x26   :  { %v967_v35 = vor.u32 %v1248_v32, %v964_v33  ;;  %v1028_v37 = vld [vmem:[#allocation7 + $0xe8] sm:$0xf0]  ;;  %v1247_v40 = vld [vmem:[#allocation7 + $0x54] sm:$0xf0]  ;;  %v1018_v41 = vld [vmem:[#allocation7 + $0xd0] sm:$0xf] }
  0x27   :  { %v1031_v39 = vor.u32 %v1264_v36, %v1028_v37  ;;  %v1263_v42 = vld [vmem:[#allocation7 + $0xd4] sm:$0xf0]  ;;  %910 = vmatmul.msk.bf16.vlgmr.msra.gmra.mxu0 %vm155_vm0, %v119_v24  ;;  %v955_v43 = vor.u32 %v1247_v40, %v954_v38  ;;  %v1246_v44 = vld [vmem:[#allocation7 + $0x54] sm:$0xf]  ;;  %v956_v45 = vld [vmem:[#allocation7 + $0x58] sm:$0xf0] }
  0x28   :  { %418 = vmatpush.bf16.msrb.mxu0 %v975_v25  ;;  %391 = vmatpush.bf16.msra.mxu2 %v963_v30  ;;  %v1262_v46 = vld [vmem:[#allocation7 + $0xd4] sm:$0xf]  ;;  %v1019_v47 = vor.u32 %v1263_v42, %v1018_v41  ;;  %v1020_v48 = vld [vmem:[#allocation7 + $0xd8] sm:$0xf0]  ;;  %v946_v49 = vld [vmem:[#allocation7 + $0x40] sm:$0xf]  ;;  %v959_v51 = vor.u32 %v1246_v44, %v956_v45 }
  0x29   :  { %432 = vmatpush.bf16.msrb.mxu1 %v1039_v26  ;;  %405 = vmatpush.bf16.msra.mxu3 %v1027_v34  ;;  %v1245_v50 = vld [vmem:[#allocation7 + $0x44] sm:$0xf0]  ;;  %v1010_v52 = vld [vmem:[#allocation7 + $0xc0] sm:$0xf]  ;;  %v1023_v54 = vor.u32 %v1262_v46, %v1020_v48  ;;  %v1244_v55 = vld [vmem:[#allocation7 + $0x44] sm:$0xf] }
  0x2a   :  { %911 = vmatmul.msk.bf16.vlgmr.msra.gmra.mxu1 %vm155_vm0, %v119_v24  ;;  %v1261_v53 = vld [vmem:[#allocation7 + $0xc4] sm:$0xf0]  ;;  %v948_v56 = vld [vmem:[#allocation7 + $0x48] sm:$0xf0]  ;;  %v947_v57 = vor.u32 %v1245_v50, %v946_v49  ;;  %v1260_v58 = vld [vmem:[#allocation7 + $0xc4] sm:$0xf] }
  0x2b   :  { %v1012_v59 = vld [vmem:[#allocation7 + $0xc8] sm:$0xf0]  ;;  %v1011_v60 = vor.u32 %v1261_v53, %v1010_v52  ;;  %v951_v61 = vor.u32 %v1244_v55, %v948_v56  ;;  %v938_v63 = vld [vmem:[#allocation7 + $0x30] sm:$0xf]  ;;  %v1243_v0 = vld [vmem:[#allocation7 + $0x34] sm:$0xf0] }
  0x2c   :  { %419 = vmatpush.bf16.msrb.mxu0 %v967_v35  ;;  %392 = vmatpush.bf16.msra.mxu2 %v955_v43  ;;  %v1015_v62 = vor.u32 %v1260_v58, %v1012_v59  ;;  %v1002_v1 = vld [vmem:[#allocation7 + $0xb0] sm:$0xf]  ;;  %v939_v2 = vor.u32 %v1243_v0, %v938_v63  ;;  %v1259_v3 = vld [vmem:[#allocation7 + $0xb4] sm:$0xf0]  ;;  %v1242_v4 = vld [vmem:[#allocation7 + $0x34] sm:$0xf] }
  0x2d   :  { %433 = vmatpush.bf16.msrb.mxu1 %v1031_v39  ;;  %406 = vmatpush.bf16.msra.mxu3 %v1019_v47  ;;  %v940_v5 = vld [vmem:[#allocation7 + $0x38] sm:$0xf0]  ;;  %v1003_v6 = vor.u32 %v1259_v3, %v1002_v1  ;;  %v1258_v8 = vld [vmem:[#allocation7 + $0xb4] sm:$0xf]  ;;  %v930_v11 = vld [vmem:[#allocation7 + $0x20] sm:$0xf] }
  0x2e   :  { %v943_v7 = vor.u32 %v1242_v4, %v940_v5  ;;  %v1004_v9 = vld [vmem:[#allocation7 + $0xb8] sm:$0xf0]  ;;  %v1241_v12 = vld [vmem:[#allocation7 + $0x24] sm:$0xf0]  ;;  %v994_v14 = vld [vmem:[#allocation7 + $0xa0] sm:$0xf] }
  0x2f   :  { %v1007_v10 = vor.u32 %v1258_v8, %v1004_v9  ;;  %v931_v13 = vor.u32 %v1241_v12, %v930_v11  ;;  %v1257_v15 = vld [vmem:[#allocation7 + $0xa4] sm:$0xf0]  ;;  %v1240_v16 = vld [vmem:[#allocation7 + $0x24] sm:$0xf]  ;;  %v932_v18 = vld [vmem:[#allocation7 + $0x28] sm:$0xf0] }
  0x30   :  { %420 = vmatpush.bf16.msrb.mxu0 %v959_v51  ;;  %393 = vmatpush.bf16.msra.mxu2 %v947_v57  ;;  %v995_v17 = vor.u32 %v1257_v15, %v994_v14  ;;  %v1256_v19 = vld [vmem:[#allocation7 + $0xa4] sm:$0xf]  ;;  %v996_v20 = vld [vmem:[#allocation7 + $0xa8] sm:$0xf0]  ;;  %v935_v21 = vor.u32 %v1240_v16, %v932_v18  ;;  %v922_v23 = vld [vmem:[#allocation7 + $0x10] sm:$0xf] }
  0x31   :  { %434 = vmatpush.bf16.msrb.mxu1 %v1023_v54  ;;  %407 = vmatpush.bf16.msra.mxu3 %v1011_v60  ;;  %v999_v22 = vor.u32 %v1256_v19, %v996_v20  ;;  %v1239_v24 = vld [vmem:[#allocation7 + $0x14] sm:$0xf0]  ;;  %v986_v25 = vld [vmem:[#allocation7 + $0x90] sm:$0xf]  ;;  %v1238_v28 = vld [vmem:[#allocation7 + $0x14] sm:$0xf] }
  0x32   :  { %v923_v26 = vor.u32 %v1239_v24, %v922_v23  ;;  %v1255_v27 = vld [vmem:[#allocation7 + $0x94] sm:$0xf0]  ;;  %v924_v29 = vld [vmem:[#allocation7 + $0x18] sm:$0xf0]  ;;  %v1254_v32 = vld [vmem:[#allocation7 + $0x94] sm:$0xf] }
  0x33   :  { %v987_v30 = vor.u32 %v1255_v27, %v986_v25  ;;  %v927_v31 = vor.u32 %v1238_v28, %v924_v29  ;;  %v988_v33 = vld [vmem:[#allocation7 + $0x98] sm:$0xf0]  ;;  %v914_v35 = vld [vmem:[#allocation7] sm:$0xf]  ;;  %v1237_v36 = vld [vmem:[#allocation7 + $0x4] sm:$0xf0] }
  0x34   :  { %421 = vmatpush.bf16.msrb.mxu0 %v951_v61  ;;  %394 = vmatpush.bf16.msra.mxu2 %v939_v2  ;;  %v991_v34 = vor.u32 %v1254_v32, %v988_v33  ;;  %v978_v37 = vld [vmem:[#allocation7 + $0x80] sm:$0xf]  ;;  %v915_v38 = vor.u32 %v1237_v36, %v914_v35  ;;  %v1253_v39 = vld [vmem:[#allocation7 + $0x84] sm:$0xf0]  ;;  %v1236_v40 = vld [vmem:[#allocation7 + $0x4] sm:$0xf] }
  0x35   :  { %435 = vmatpush.bf16.msrb.mxu1 %v1015_v62  ;;  %408 = vmatpush.bf16.msra.mxu3 %v1003_v6  ;;  %v916_v41 = vld [vmem:[#allocation7 + $0x8] sm:$0xf0]  ;;  %v979_v42 = vor.u32 %v1253_v39, %v978_v37  ;;  %v1252_v44 = vld [vmem:[#allocation7 + $0x84] sm:$0xf]  ;;  %v1162_v47 = vld [vmem:[#allocation8 + $0xf0] sm:$0xf] }
  0x36   :  { %v919_v43 = vor.u32 %v1236_v40, %v916_v41  ;;  %v980_v45 = vld [vmem:[#allocation7 + $0x88] sm:$0xf0]  ;;  %v1299_v48 = vld [vmem:[#allocation8 + $0xf4] sm:$0xf0]  ;;  %v1298_v49 = vld [vmem:[#allocation8 + $0xf4] sm:$0xf] }
  0x37   :  { %v983_v46 = vor.u32 %v1252_v44, %v980_v45  ;;  %v1163_v50 = vor.u32 %v1299_v48, %v1162_v47  ;;  %v1164_v51 = vld [vmem:[#allocation8 + $0xf8] sm:$0xf0]  ;;  %v1154_v52 = vld [vmem:[#allocation8 + $0xe0] sm:$0xf]  ;;  %v1297_v53 = vld [vmem:[#allocation8 + $0xe4] sm:$0xf0] }
  0x38   :  { %422 = vmatpush.bf16.msrb.mxu0 %v943_v7  ;;  %395 = vmatpush.bf16.msra.mxu2 %v931_v13  ;;  %v1167_v54 = vor.u32 %v1298_v49, %v1164_v51  ;;  %v1296_v55 = vld [vmem:[#allocation8 + $0xe4] sm:$0xf]  ;;  %v1156_v56 = vld [vmem:[#allocation8 + $0xe8] sm:$0xf0]  ;;  %v1098_v57 = vld [vmem:[#allocation8 + $0x70] sm:$0xf]  ;;  %v1155_v58 = vor.u32 %v1297_v53, %v1154_v52 }
  0x39   :  { %436 = vmatpush.bf16.msrb.mxu1 %v1007_v10  ;;  %409 = vmatpush.bf16.msra.mxu3 %v995_v17  ;;  %v1283_v59 = vld [vmem:[#allocation8 + $0x74] sm:$0xf0]  ;;  %v1282_v60 = vld [vmem:[#allocation8 + $0x74] sm:$0xf]  ;;  %v1100_v61 = vld [vmem:[#allocation8 + $0x78] sm:$0xf0]  ;;  %v1159_v62 = vor.u32 %v1296_v55, %v1156_v56 }
  0x3a   :  { %v1099_v63 = vor.u32 %v1283_v59, %v1098_v57  ;;  %v1103_v0 = vor.u32 %v1282_v60, %v1100_v61  ;;  %v1146_v1 = vld [vmem:[#allocation8 + $0xd0] sm:$0xf]  ;;  %v1295_v2 = vld [vmem:[#allocation8 + $0xd4] sm:$0xf0]  ;;  %v1294_v3 = vld [vmem:[#allocation8 + $0xd4] sm:$0xf] }
  0x3b   :  { %v1148_v4 = vld [vmem:[#allocation8 + $0xd8] sm:$0xf0]  ;;  %v1090_v5 = vld [vmem:[#allocation8 + $0x60] sm:$0xf]  ;;  %v1281_v6 = vld [vmem:[#allocation8 + $0x64] sm:$0xf0]  ;;  %v1147_v10 = vor.u32 %v1295_v2, %v1146_v1 }
  0x3c   :  { %423 = vmatpush.bf16.msrb.mxu0 %v935_v21  ;;  %396 = vmatpush.bf16.msra.mxu2 %v923_v26  ;;  %v1091_v7 = vor.u32 %v1281_v6, %v1090_v5  ;;  %v1280_v8 = vld [vmem:[#allocation8 + $0x64] sm:$0xf]  ;;  %v1092_v9 = vld [vmem:[#allocation8 + $0x68] sm:$0xf0]  ;;  %v1151_v12 = vor.u32 %v1294_v3, %v1148_v4  ;;  %v1138_v13 = vld [vmem:[#allocation8 + $0xc0] sm:$0xf] }
  0x3d   :  { %437 = vmatpush.bf16.msrb.mxu1 %v999_v22  ;;  %410 = vmatpush.bf16.msra.mxu3 %v987_v30  ;;  %v1095_v11 = vor.u32 %v1280_v8, %v1092_v9  ;;  %v1293_v14 = vld [vmem:[#allocation8 + $0xc4] sm:$0xf0]  ;;  %v1292_v15 = vld [vmem:[#allocation8 + $0xc4] sm:$0xf]  ;;  %v1140_v16 = vld [vmem:[#allocation8 + $0xc8] sm:$0xf0] }
  0x3e   :  { %v1139_v17 = vor.u32 %v1293_v14, %v1138_v13  ;;  %v1143_v18 = vor.u32 %v1292_v15, %v1140_v16  ;;  %v120_v19 = vld [vmem:[#allocation11] ss:$4 sm:$0x3]  ;;  %v1082_v36 = vld [vmem:[#allocation8 + $0x50] sm:$0xf]  ;;  %s876_s5 = sshll.u32 %s1521_s4, 4  ;;  %s877_s5 = int_to_ptr.vmem [resolvable:$true] %s876_s5 }
  0x3f   :  { %v131_v22 = vperm.slane %v120_v19, 0  ;;  %v132_v23 = vperm.slane %v120_v19, 1  ;;  %v1279_v37 = vld [vmem:[#allocation8 + $0x54] sm:$0xf0]  ;;  %v1084_v40 = vld [vmem:[#allocation8 + $0x58] sm:$0xf0] }
  0x40   :  { %424 = vmatpush.bf16.msrb.mxu0 %v927_v31  ;;  %397 = vmatpush.bf16.msra.mxu2 %v915_v38  ;;  %v1278_v38 = vld [vmem:[#allocation8 + $0x54] sm:$0xf]  ;;  %v1083_v39 = vor.u32 %v1279_v37, %v1082_v36  ;;  %v1074_v48 = vld [vmem:[#allocation8 + $0x40] sm:$0xf]  ;;  %v1277_v49 = vld [vmem:[#allocation8 + $0x44] sm:$0xf0] }
  0x41   :  { %438 = vmatpush.bf16.msrb.mxu1 %v991_v34  ;;  %411 = vmatpush.bf16.msra.mxu3 %v979_v42  ;;  %v1087_v41 = vor.u32 %v1278_v38, %v1084_v40  ;;  %v1130_v42 = vld [vmem:[#allocation8 + $0xb0] sm:$0xf]  ;;  %v1290_v44 = vld [vmem:[#allocation8 + $0xb4] sm:$0xf]  ;;  %v1075_v51 = vor.u32 %v1277_v49, %v1074_v48  ;;  %v1076_v52 = vld [vmem:[#allocation8 + $0x48] sm:$0xf0] }
  0x42   :  { %v1289_v55 = vld [vmem:[#allocation8 + $0xa4] sm:$0xf0]  ;;  %v1288_v56 = vld [vmem:[#allocation8 + $0xa4] sm:$0xf]  ;;  %v1066_v60 = vld [vmem:[#allocation8 + $0x30] sm:$0xf] }
  0x43   :  { %v1275_v61 = vld [vmem:[#allocation8 + $0x34] sm:$0xf0]  ;;  %v1114_v2 = vld [vmem:[#allocation8 + $0x90] sm:$0xf]  ;;  %v1286_v4 = vld [vmem:[#allocation8 + $0x94] sm:$0xf] }
  0x44   :  { %425 = vmatpush.bf16.msrb.mxu0 %v919_v43  ;;  %649 = vmatpush.bf16.msrb.mxu2 %v1099_v63  ;;  %v1291_v43 = vld [vmem:[#allocation8 + $0xb4] sm:$0xf0]  ;;  %v1067_v63 = vor.u32 %v1275_v61, %v1066_v60  ;;  %v1116_v6 = vld [vmem:[#allocation8 + $0x98] sm:$0xf0]  ;;  %v1058_v8 = vld [vmem:[#allocation8 + $0x20] sm:$0xf] }
  0x45   :  { %439 = vmatpush.bf16.msrb.mxu1 %v983_v46  ;;  %663 = vmatpush.bf16.msrb.mxu3 %v1163_v50  ;;  %v1131_v45 = vor.u32 %v1291_v43, %v1130_v42  ;;  %v1132_v46 = vld [vmem:[#allocation8 + $0xb8] sm:$0xf0]  ;;  %v1276_v50 = vld [vmem:[#allocation8 + $0x44] sm:$0xf]  ;;  %v1287_v3 = vld [vmem:[#allocation8 + $0x94] sm:$0xf0] }
  0x46   :  { %v1135_v47 = vor.u32 %v1290_v44, %v1132_v46  ;;  %v1079_v53 = vor.u32 %v1276_v50, %v1076_v52  ;;  %v1115_v5 = vor.u32 %v1287_v3, %v1114_v2  ;;  %v1273_v9 = vld [vmem:[#allocation8 + $0x24] sm:$0xf0]  ;;  %v1106_v14 = vld [vmem:[#allocation8 + $0x80] sm:$0xf]  ;;  %v1284_v16 = vld [vmem:[#allocation8 + $0x84] sm:$0xf] }
  0x47   :  { %v1285_v15 = vld [vmem:[#allocation8 + $0x84] sm:$0xf0]  ;;  %v1306_v61 = vld [vmem:[#allocation10 + $0x30] sm:$0xff]  ;;  %v1303_v3 = vld [vmem:[#allocation10 + $0x18] sm:$0xff]  ;;  %s878_s29 = sshll.u32 %s1592_s6, 4  ;;  %s879_s29 = int_to_ptr.hbm [resolvable:$true] %s878_s29 }
  0x48   :  { %677 = vmatpush.bf16.msra.mxu0 %v1103_v0  ;;  %650 = vmatpush.bf16.msrb.mxu2 %v1091_v7  ;;  %v1068_v0 = vld [vmem:[#allocation8 + $0x38] sm:$0xf0]  ;;  %v1119_v7 = vor.u32 %v1286_v4, %v1116_v6  ;;  %v1313_v60 = vld [vmem:[#allocation10 + $0x68] sm:$0xff]  ;;  %v1310_v2 = vld [vmem:[#allocation10 + $0x50] sm:$0xff] }
  0x49   :  { %691 = vmatpush.bf16.msra.mxu1 %v1167_v54  ;;  %664 = vmatpush.bf16.msrb.mxu3 %v1155_v58  ;;  %v1122_v54 = vld [vmem:[#allocation8 + $0xa0] sm:$0xf]  ;;  %v1124_v58 = vld [vmem:[#allocation8 + $0xa8] sm:$0xf0] }
  0x4a   :  { %v1123_v57 = vor.u32 %v1289_v55, %v1122_v54  ;;  %v1127_v59 = vor.u32 %v1288_v56, %v1124_v58  ;;  %v1309_v4 = vld [vmem:[#allocation10 + $0x48] sm:$0xff]  ;;  %v1308_v6 = vld [vmem:[#allocation10 + $0x40] sm:$0xff] }
  0x4c   :  { %678 = vmatpush.bf16.msra.mxu0 %v1095_v11  ;;  %651 = vmatpush.bf16.msrb.mxu2 %v1083_v39  ;;  %v1059_v11 = vor.u32 %v1273_v9, %v1058_v8  ;;  %v1300_v8 = vld [vmem:[#allocation10] sm:$0xff] }
  0x4d   :  { %692 = vmatpush.bf16.msra.mxu1 %v1159_v62  ;;  %665 = vmatpush.bf16.msrb.mxu3 %v1147_v10  ;;  %v1274_v62 = vld [vmem:[#allocation8 + $0x34] sm:$0xf]  ;;  %v1272_v10 = vld [vmem:[#allocation8 + $0x24] sm:$0xf] }
  0x4e   :  { %v1071_v1 = vor.u32 %v1274_v62, %v1068_v0  ;;  %v1312_v62 = vld [vmem:[#allocation10 + $0x60] sm:$0xff]  ;;  %v1311_v0 = vld [vmem:[#allocation10 + $0x58] sm:$0xff] }
  0x4f   :  { %v124_v9 = vld [vmem:[#allocation11 + $0x2] ss:$4 sm:$0x3] }
  0x50   :  { %679 = vmatpush.bf16.msra.mxu0 %v1087_v41  ;;  %652 = vmatpush.bf16.msrb.mxu2 %v1075_v51 }
  0x51   :  { %693 = vmatpush.bf16.msra.mxu1 %v1151_v12  ;;  %666 = vmatpush.bf16.msrb.mxu3 %v1139_v17  ;;  %v1060_v12 = vld [vmem:[#allocation8 + $0x28] sm:$0xf0]  ;;  %v1107_v17 = vor.u32 %v1285_v15, %v1106_v14 }
  0x52   :  { %v1063_v13 = vor.u32 %v1272_v10, %v1060_v12  ;;  %v486_v12 = vperm.slane %v124_v9, 1 }
  0x54   :  { %680 = vmatpush.bf16.msra.mxu0 %v1079_v53  ;;  %653 = vmatpush.bf16.msrb.mxu2 %v1067_v63  ;;  %v1305_v63 = vld [vmem:[#allocation10 + $0x28] sm:$0xff] }
  0x55   :  { %694 = vmatpush.bf16.msra.mxu1 %v1143_v18  ;;  %667 = vmatpush.bf16.msrb.mxu3 %v1131_v45  ;;  %v1108_v18 = vld [vmem:[#allocation8 + $0x88] sm:$0xf0] }
  0x56   :  { %v1111_v19 = vor.u32 %v1284_v16, %v1108_v18  ;;  %v485_v16 = vperm.slane %v124_v9, 0 }
  0x58   :  { %681 = vmatpush.bf16.msra.mxu0 %v1071_v1  ;;  %654 = vmatpush.bf16.msrb.mxu2 %v1059_v11  ;;  %v1304_v1 = vld [vmem:[#allocation10 + $0x20] sm:$0xff] }
  0x59   :  { %695 = vmatpush.bf16.msra.mxu1 %v1135_v47  ;;  %668 = vmatpush.bf16.msrb.mxu3 %v1123_v57 }
  0x5c   :  { %682 = vmatpush.bf16.msra.mxu0 %v1063_v13 }
  0x5d   :  { %696 = vmatpush.bf16.msra.mxu1 %v1127_v59  ;;  %669 = vmatpush.bf16.msrb.mxu3 %v1115_v5  ;;  %v1302_v5 = vld [vmem:[#allocation10 + $0x10] sm:$0xff] }
  0x61   :  { %697 = vmatpush.bf16.msra.mxu1 %v1119_v7  ;;  %670 = vmatpush.bf16.msrb.mxu3 %v1107_v17  ;;  %v1301_v7 = vld [vmem:[#allocation10 + $0x8] sm:$0xff] }
  0x65   :  { %698 = vmatpush.bf16.msra.mxu1 %v1111_v19 }
  0xa4   :  { %v168_v20 = vpop.f32.mrf.mxu0 }
  0xa5   :  { %v169_v24 = vadd.f32 %v168_v20, %v131_v22  ;;  %v1050_v20 = vld [vmem:[#allocation8 + $0x10] sm:$0xf] }
  0xa7   :  { %v182_v21 = vpop.f32.mrf.mxu1  ;;  %v187_v30 = vmax.f32 %v169_v24, 0.0  ;;  %v1052_v24 = vld [vmem:[#allocation8 + $0x18] sm:$0xf0] }
  0xa8   :  { %v183_v25 = vadd.f32 %v182_v21, %v132_v23  ;;  %v1271_v21 = vld [vmem:[#allocation8 + $0x14] sm:$0xf0] }
  0xaa   :  { %v188_v32 = vmax.f32 %v183_v25, 0.0 }
  0xac   :  { %v170_v26 = vpop.f32.mrf.mxu0 }
  0xad   :  { %v171_v27 = vadd.f32 %v170_v26, %v131_v22  ;;  %v1270_v22 = vld [vmem:[#allocation8 + $0x14] sm:$0xf]  ;;  %v1042_v26 = vld [vmem:[#allocation8] sm:$0xf] }
  0xae   :  { %v1055_v25 = vor.u32 %v1270_v22, %v1052_v24 }
  0xaf   :  { %v184_v28 = vpop.f32.mrf.mxu1  ;;  %v189_v31 = vmax.f32 %v171_v27, 0.0  ;;  %v1269_v27 = vld [vmem:[#allocation8 + $0x4] sm:$0xf0] }
  0xb0   :  { %v185_v29 = vadd.f32 %v184_v28, %v132_v23  ;;  %v1051_v23 = vor.u32 %v1271_v21, %v1050_v20  ;;  %683 = vmatpush.bf16.msra.mxu0 %v1055_v25  ;;  %v1268_v28 = vld [vmem:[#allocation8 + $0x4] sm:$0xf] }
  0xb1   :  { %v191_v34 = vpack.c.bf16 %v189_v31, %v187_v30  ;;  %v1044_v30 = vld [vmem:[#allocation8 + $0x8] sm:$0xf0] }
  0xb2   :  { %v190_v33 = vmax.f32 %v185_v29, 0.0  ;;  %655 = vmatpush.bf16.msrb.mxu2 %v1051_v23  ;;  %v1043_v29 = vor.u32 %v1269_v27, %v1042_v26  ;;  %v1047_v31 = vor.u32 %v1268_v28, %v1044_v30 }
  0xb3   :  { %398 = vmatmul.bf16.vlgmr.msra.gmra.mxu2 %v191_v34  ;;  %426 = vmatmul.bf16.vlgmr.msrb.gmra.mxu0 %v191_v34  ;;  %v1314_v34 = vld [vmem:[#allocation10 + $0x70] sm:$0xff] }
  0xb4   :  { %v192_v35 = vpack.c.bf16 %v190_v33, %v188_v32  ;;  %684 = vmatpush.bf16.msra.mxu0 %v1047_v31  ;;  %v1315_v32 = vld [vmem:[#allocation10 + $0x78] sm:$0xff] }
  0xb5   :  { %v1307_v33 = vld [vmem:[#allocation10 + $0x38] sm:$0xff] }
  0xb6   :  { %412 = vmatmul.bf16.vlgmr.msra.gmra.mxu3 %v192_v35  ;;  %440 = vmatmul.bf16.vlgmr.msrb.gmra.mxu1 %v192_v35  ;;  %v122_v35 = vld [vmem:[#allocation11 + $0x1] ss:$4 sm:$0x3] }
  0xb7   :  { %656 = vmatpush.bf16.msrb.mxu2 %v1043_v29  ;;  %854 = vmatpush.bf16.msra.mxu3 %v1315_v32  ;;  %v227_v37 = vperm.slane %v122_v35, 1  ;;  %v226_v41 = vperm.slane %v122_v35, 0 }
  0xbb   :  { %840 = vmatpush.bf16.msra.mxu2 %v1307_v33  ;;  %855 = vmatpush.bf16.msra.mxu3 %v1314_v34 }
  0xbf   :  { %856 = vmatpush.bf16.msra.mxu3 %v1313_v60  ;;  %841 = vmatpush.bf16.msra.mxu2 %v1306_v61 }
  0xc3   :  { %857 = vmatpush.bf16.msra.mxu3 %v1312_v62  ;;  %842 = vmatpush.bf16.msra.mxu2 %v1305_v63 }
  0xc7   :  { %858 = vmatpush.bf16.msra.mxu3 %v1311_v0  ;;  %843 = vmatpush.bf16.msra.mxu2 %v1304_v1 }
  0xcb   :  { %859 = vmatpush.bf16.msra.mxu3 %v1310_v2  ;;  %844 = vmatpush.bf16.msra.mxu2 %v1303_v3 }
  0xcf   :  { %860 = vmatpush.bf16.msra.mxu3 %v1309_v4  ;;  %845 = vmatpush.bf16.msra.mxu2 %v1302_v5 }
  0xd3   :  { %861 = vmatpush.bf16.msra.mxu3 %v1308_v6  ;;  %846 = vmatpush.bf16.msra.mxu2 %v1301_v7 }
  0xd7   :  { %847 = vmatpush.bf16.msra.mxu2 %v1300_v8 }
 0x130   :  { %v427_v36 = vpop.f32.mrf.mxu0 }
 0x131   :  { %v428_v39 = vadd.f32 %v427_v36, %v227_v37  ;;  %v1332_v36 = vld [vmem:[#allocation11 + $0x3] ss:$0 sm:$0xff] }
 0x133   :  { %v441_v38 = vpop.f32.mrf.mxu1 }
 0x134   :  { %v442_v44 = vadd.f32 %v441_v38, %v428_v39 }
 0x136   :  { %v399_v40 = vpop.f32.mrf.mxu2  ;;  %v447_v49 = vmax.f32 %v442_v44, 0.0 }
 0x137   :  { %v400_v47 = vadd.f32 %v399_v40, %v226_v41 }
 0x138   :  { %v429_v43 = vpop.f32.mrf.mxu0 }
 0x139   :  { %v413_v42 = vpop.f32.mrf.mxu3  ;;  %v430_v45 = vadd.f32 %v429_v43, %v227_v37 }
 0x13a   :  { %v414_v52 = vadd.f32 %v413_v42, %v400_v47 }
 0x13b   :  { %v443_v46 = vpop.f32.mrf.mxu1 }
 0x13c   :  { %v444_v48 = vadd.f32 %v443_v46, %v430_v45  ;;  %v446_v57 = vmax.f32 %v414_v52, 0.0 }
 0x13e   :  { %v449_v50 = vmax.f32 %v444_v48, 0.0  ;;  %v401_v51 = vpop.f32.mrf.mxu2 }
 0x13f   :  { %v402_v54 = vadd.f32 %v401_v51, %v226_v41 }
 0x140   :  { %v451_v53 = vpack.c.bf16 %v449_v50, %v447_v49 }
 0x141   :  { %v415_v55 = vpop.f32.mrf.mxu3 }
 0x142   :  { %v416_v56 = vadd.f32 %v415_v55, %v402_v54  ;;  %671 = vmatmul.bf16.vlgmr.msrb.gmra.mxu3 %v451_v53  ;;  %699 = vmatmul.bf16.vlgmr.msra.gmra.mxu1 %v451_v53 }
 0x144   :  { %v448_v58 = vmax.f32 %v416_v56, 0.0 }
 0x146   :  { %v450_v59 = vpack.c.bf16 %v448_v58, %v446_v57 }
 0x148   :  { %657 = vmatmul.bf16.vlgmr.msrb.gmra.mxu2 %v450_v59  ;;  %685 = vmatmul.bf16.vlgmr.msra.gmra.mxu0 %v450_v59 }
 0x1bf   :  { %v700_v10 = vpop.f32.mrf.mxu1 }
 0x1c5   :  { %v686_v11 = vpop.f32.mrf.mxu0  ;;  %v672_v14 = vpop.f32.mrf.mxu3 }
 0x1c6   :  { %v687_v13 = vadd.f32 %v686_v11, %v486_v12 }
 0x1c7   :  { %v702_v20 = vpop.f32.mrf.mxu1 }
 0x1c8   :  { %v701_v18 = vadd.f32 %v700_v10, %v687_v13 }
 0x1ca   :  { %v706_v23 = vmax.f32 %v701_v18, 0.0 }
 0x1cb   :  { %v658_v15 = vpop.f32.mrf.mxu2 }
 0x1cc   :  { %v659_v21 = vadd.f32 %v658_v15, %v485_v16 }
 0x1cd   :  { %v688_v17 = vpop.f32.mrf.mxu0  ;;  %v674_v29 = vpop.f32.mrf.mxu3 }
 0x1ce   :  { %v689_v19 = vadd.f32 %v688_v17, %v486_v12  ;;  %v673_v26 = vadd.f32 %v672_v14, %v659_v21 }
 0x1d0   :  { %v703_v22 = vadd.f32 %v702_v20, %v689_v19  ;;  %v705_v31 = vmax.f32 %v673_v26, 0.0 }
 0x1d2   :  { %v708_v24 = vmax.f32 %v703_v22, 0.0 }
 0x1d3   :  { %v660_v25 = vpop.f32.mrf.mxu2 }
 0x1d4   :  { %v710_v27 = vpack.c.bf16 %v708_v24, %v706_v23  ;;  %v661_v28 = vadd.f32 %v660_v25, %v485_v16 }
 0x1d6   :  { %v675_v30 = vadd.f32 %v674_v29, %v661_v28  ;;  %862 = vmatmul.bf16.vlgmr.msra.gmra.mxu3 %v710_v27 }
 0x1d8   :  { %v707_v32 = vmax.f32 %v675_v30, 0.0 }
 0x1da   :  { %v709_v33 = vpack.c.bf16 %v707_v32, %v705_v31 }
 0x1dc   :  { %848 = vmatmul.bf16.vlgmr.msra.gmra.mxu2 %v709_v33 }
 0x259   :  { %v863_v34 = vpop.f32.mrf.mxu3 }
 0x25f   :  { %v849_v35 = vpop.f32.mrf.mxu2 }
 0x260   :  { %v850_v37 = vadd.f32 %v1332_v36, %v849_v35 }
 0x261   :  { %v865_v40 = vpop.f32.mrf.mxu3 }
 0x262   :  { %v864_v41 = vadd.f32 %v863_v34, %v850_v37 }
 0x267   :  { %v851_v38 = vpop.f32.mrf.mxu2 }
 0x268   :  { %v852_v39 = vadd.f32 %v1332_v36, %v851_v38 }
 0x26a   :  { %v866_v42 = vadd.f32 %v865_v40, %v852_v39 }
 0x26c   :  { %v1319_v43 = vpack.c.bf16 %v866_v42, %v864_v41 }
 0x26e   :  { %1320 = vst [vmem:[#allocation13] sm:$0xff] %v1319_v43  }
 0x26f   :  { %884 = dma.vmem_to_hbm [thread:$0]  %s877_s5, 128, %s879_s29, [#allocation4], %s1518_s23, %s1518_s23, %s1519_s24  }
 0x270   :  { %1509 = dma.done.wait [#allocation4], 128  }
 0x271   :  { %1510 = vsyncadd [#allocation4], 4294967168 }
 0x272   :  { %889 = vsyncpa [#allocation3], 1 }
 0x273   :  { %890 = vsyncpa [#allocation6], 1 }
 0x274   :  { %891 = vsyncpa [#allocation9], 1 }
 0x275   :  { %892 = vsyncpa [#allocation12], 1 }
 0x276   :  { %893 = vsyncpa [#allocation4], 1 }

</bundles_post_ra>
